<compile_context>
chip_gen: v6e
topology: v6e:2x2x1
jax: 0.10.0
libtpu: 0.0.40
codegen_flags: <defaults>
</compile_context>

<pallas_src>
import functools

import jax
import jax.numpy as jnp
import numpy as np
from jax.experimental import pallas as pl
from jax.experimental.pallas import tpu as pltpu


def _yolo_kernel(grid_ref, x_ref, o_ref, *, stride, anchors_ws):
    # grid_ref: (2, FF) f32   -- row 0 = grid_x, row 1 = grid_y (flattened y*F+x)
    # x_ref:    (tb, C, FF)   -- raw logits for tb batch rows of one anchor
    # o_ref:    (tb, FF, C)   -- decoded predictions, channel-last (final layout)
    a = pl.program_id(0)
    tb, C, FF = x_ref.shape

    x = x_ref[...].astype(jnp.float32)       # cast in vregs (input may be bf16)
    s = jnp.float32(stride)

    # Select this anchor's (w*stride, h*stride): static config -> scalar chain.
    aw = jnp.float32(anchors_ws[0][0])
    ah = jnp.float32(anchors_ws[0][1])
    for i in range(1, len(anchors_ws)):
        aw = jnp.where(a == i, jnp.float32(anchors_ws[i][0]), aw)
        ah = jnp.where(a == i, jnp.float32(anchors_ws[i][1]), ah)

    g = grid_ref[...]                        # (2, FF)
    gx = g[0:1, :].reshape(1, 1, FF)
    gy = g[1:2, :].reshape(1, 1, FF)

    # Full-block math; per-channel variants picked with a channel iota + where.
    ch = jax.lax.broadcasted_iota(jnp.int32, (tb, C, FF), 1)
    sig = jax.nn.sigmoid(x)                              # needed for C-2 channels
    xy = (sig + jnp.where(ch == 0, gx, gy)) * s          # valid for channels 0,1
    # exp over the whole block keeps everything full-vreg / branch-free; the
    # extra EUP work on the discarded channels stays hidden under the HBM DMA.
    wh = jnp.exp(x) * jnp.where(ch == 2, aw, ah)         # valid for channels 2,3
    res = jnp.where(ch <= 1, xy, jnp.where(ch <= 3, wh, sig))

    # Fused output permute: (tb, C, FF) -> per-batch-row (FF, C) slab stores.
    for b in range(tb):
        o_ref[b] = res[b].T.astype(o_ref.dtype)


def yolo_layer_forward(output_nchw, *, anchors, anchor_mask, num_classes, stride):
    """Inference forward of YoloLayer. Returns (B, A*F*F, 5+num_classes) f32."""
    B, ch_in, F, F2 = output_nchw.shape
    assert F == F2
    A = len(anchor_mask)
    C = 5 + num_classes
    FF = F * F
    assert ch_in == A * C, f"expected {A * C} input channels, got {ch_in}"

    # (aw/stride)*stride baked host-side (== reference anchors_grid * stride).
    anchors_ws = tuple(
        ((float(anchors[i][0]) / float(stride)) * float(stride),
         (float(anchors[i][1]) / float(stride)) * float(stride))
        for i in anchor_mask)

    # Free reshape: NCHW -> (B, A, C, F*F).  No host-side dtype cast.
    x = output_nchw.reshape(B, A, C, FF)

    # Precomputed flattened grid planes (row 0: x index, row 1: y index).
    ii = np.arange(FF)
    grid_plane = jnp.asarray(
        np.stack([(ii % F).astype(np.float32), (ii // F).astype(np.float32)],
                 axis=0))                                        # (2, FF)

    # Batch-tile so double-buffered in+out blocks fit a v7x-safe VMEM budget.
    per_b = C * FF * (x.dtype.itemsize + 4)      # one input + one f32 output row
    budget = 24 * 1024 * 1024
    tb = 1
    for d in range(B, 0, -1):
        if B % d == 0 and 2 * per_b * d <= budget:
            tb = d
            break

    out = pl.pallas_call(
        functools.partial(_yolo_kernel, stride=float(stride),
                          anchors_ws=anchors_ws),
        out_shape=jax.ShapeDtypeStruct((B, A, FF, C), jnp.float32),
        grid=(A, B // tb),
        in_specs=[
            pl.BlockSpec((2, FF), lambda a, bt: (0, 0)),
            pl.BlockSpec((tb, None, C, FF), lambda a, bt: (bt, a, 0, 0)),
        ],
        out_specs=pl.BlockSpec((tb, None, FF, C), lambda a, bt: (bt, a, 0, 0)),
        compiler_params=pltpu.CompilerParams(
            dimension_semantics=("parallel", "parallel"),
            vmem_limit_bytes=32 * 1024 * 1024),
    )(grid_plane, x)

    # (B, A, F*F, C) -> (B, A*F*F, C): contiguous collapse, free.
    return out.reshape(B, A * FF, C)
    # TODO(synk): matplotlib heatmap visualization (plt.imshow of objectness)
    # is a display-only side effect with no tensor semantics; omitted.


def _yolo_ref_numpy(x_nchw, anchors, anchor_mask, num_classes, stride):
    """Pure-numpy reference mirroring the PyTorch forward."""
    B, _, F, _ = x_nchw.shape
    A = len(anchor_mask)
    C = 5 + num_classes
    out = x_nchw.reshape(B, A, C, F, F).transpose(0, 1, 3, 4, 2).astype(np.float64)
    gx = np.arange(F, dtype=np.float64)[None, None, None, :]
    gy = np.arange(F, dtype=np.float64)[None, None, :, None]
    ag = np.asarray([anchors[i] for i in anchor_mask], dtype=np.float64) / stride
    aw = ag[:, 0].reshape(1, A, 1, 1)
    ah = ag[:, 1].reshape(1, A, 1, 1)
    sig = lambda v: 1.0 / (1.0 + np.exp(-v))
    pred = out.copy()
    pred[..., 0] = (sig(out[..., 0]) + gx) * stride
    pred[..., 1] = (sig(out[..., 1]) + gy) * stride
    pred[..., 2] = np.exp(out[..., 2]) * aw * stride
    pred[..., 3] = np.exp(out[..., 3]) * ah * stride
    pred[..., 4:] = sig(out[..., 4:])
    return pred.reshape(B, -1, C)


if __name__ == "__main__":
    # Module config (deterministic, in-script).
    anchor_mask = [0, 1]
    num_classes = 3
    anchors = [(12.0, 16.0), (19.0, 36.0), (40.0, 28.0)]
    stride = 32
    B, F = 2, 16
    A = len(anchor_mask)
    C = 5 + num_classes                      # 8

    key = jax.random.PRNGKey(0)
    x = jax.random.normal(key, (B, A * C, F, F), dtype=jnp.float32) * 0.5

    pred = yolo_layer_forward(
        x, anchors=anchors, anchor_mask=anchor_mask,
        num_classes=num_classes, stride=stride)
    pred = jax.block_until_ready(pred)

    ref = _yolo_ref_numpy(np.asarray(x), anchors, anchor_mask, num_classes, stride)
    assert pred.shape == (B, A * F * F, C), pred.shape
    np.testing.assert_allclose(np.asarray(pred), ref, rtol=1e-5, atol=1e-5)

    print("KERNEL_OK")
</pallas_src>

<mosaic_0001>
module attributes {stable_mosaic.version = 11 : i64} {
  func.func @_yolo_kernel(%arg0: i32, %arg1: i32, %arg2: memref<2x256xf32, #tpu.memory_space<vmem>>, %arg3: memref<2x1x8x256xf32, #tpu.memory_space<vmem>>, %arg4: memref<2x1x256x8xf32, #tpu.memory_space<vmem>>) attributes {dimension_semantics = [#tpu.dimension_semantics<parallel>, #tpu.dimension_semantics<parallel>], iteration_bounds = array<i64: 2, 1>, scalar_prefetch = 0 : i64, scratch_operands = 0 : i64, tpu.core_type = #tpu.core_type<tc>, window_params = [{pipeline_mode = #tpu.pipeline_mode<synchronous>, transform_indices = @transform_0, window_bounds = array<i64: 2, 256>}, {transform_indices = @transform_1, window_bounds = array<i64: 2, 1, 8, 256>}, {transform_indices = @transform_2, window_bounds = array<i64: 2, 1, 256, 8>}]} {
    %c0 = arith.constant 0 : index
    %c0_0 = arith.constant 0 : index
    %c0_1 = arith.constant 0 : index
    %c0_2 = arith.constant 0 : index
    %0 = vector.load %arg3[%c0, %c0_0, %c0_1, %c0_2] : memref<2x1x8x256xf32, #tpu.memory_space<vmem>>, vector<2x1x8x256xf32>
    %1 = vector.shape_cast %0 : vector<2x1x8x256xf32> to vector<2x8x256xf32>
    %c1_i32 = arith.constant 1 : i32
    %2 = arith.cmpi eq, %arg0, %c1_i32 : i32
    %cst = arith.constant 1.900000e+01 : f32
    %cst_3 = arith.constant 1.200000e+01 : f32
    %3 = arith.select %2, %cst, %cst_3 : f32
    %c1_i32_4 = arith.constant 1 : i32
    %4 = arith.cmpi eq, %arg0, %c1_i32_4 : i32
    %cst_5 = arith.constant 3.600000e+01 : f32
    %cst_6 = arith.constant 1.600000e+01 : f32
    %5 = arith.select %4, %cst_5, %cst_6 : f32
    %c0_7 = arith.constant 0 : index
    %c0_8 = arith.constant 0 : index
    %6 = vector.load %arg2[%c0_7, %c0_8] : memref<2x256xf32, #tpu.memory_space<vmem>>, vector<2x256xf32>
    %7 = vector.extract_strided_slice %6 {offsets = [0, 0], sizes = [1, 256], strides = [1, 1]} : vector<2x256xf32> to vector<1x256xf32>
    %8 = vector.shape_cast %7 : vector<1x256xf32> to vector<1x1x256xf32>
    %9 = vector.extract_strided_slice %6 {offsets = [1, 0], sizes = [1, 256], strides = [1, 1]} : vector<2x256xf32> to vector<1x256xf32>
    %10 = vector.shape_cast %9 : vector<1x256xf32> to vector<1x1x256xf32>
    %11 = tpu.iota {dimensions = array<i32: 1>} : vector<2x8x256xi32>
    %12 = arith.negf %1 : vector<2x8x256xf32>
    %13 = math.exp %12 : vector<2x8x256xf32>
    %cst_9 = arith.constant 1.000000e+00 : f32
    %14 = vector.broadcast %cst_9 : f32 to vector<2x8x256xf32>
    %15 = arith.addf %14, %13 : vector<2x8x256xf32>
    %16 = arith.divf %14, %15 : vector<2x8x256xf32>
    %c0_i32 = arith.constant 0 : i32
    %17 = vector.broadcast %c0_i32 : i32 to vector<2x8x256xi32>
    %18 = arith.cmpi eq, %11, %17 : vector<2x8x256xi32>
    %19 = vector.shape_cast %8 : vector<1x1x256xf32> to vector<1x1x256xf32>
    %20 = vector.broadcast %19 : vector<1x1x256xf32> to vector<2x8x256xf32>
    %21 = vector.shape_cast %10 : vector<1x1x256xf32> to vector<1x1x256xf32>
    %22 = vector.broadcast %21 : vector<1x1x256xf32> to vector<2x8x256xf32>
    %23 = arith.select %18, %20, %22 : vector<2x8x256xi1>, vector<2x8x256xf32>
    %24 = arith.addf %16, %23 : vector<2x8x256xf32>
    %cst_10 = arith.constant 3.200000e+01 : f32
    %25 = vector.broadcast %cst_10 : f32 to vector<2x8x256xf32>
    %26 = arith.mulf %24, %25 : vector<2x8x256xf32>
    %27 = math.exp %1 : vector<2x8x256xf32>
    %c2_i32 = arith.constant 2 : i32
    %28 = vector.broadcast %c2_i32 : i32 to vector<2x8x256xi32>
    %29 = arith.cmpi eq, %11, %28 : vector<2x8x256xi32>
    %30 = vector.broadcast %3 : f32 to vector<2x8x256xf32>
    %31 = vector.broadcast %5 : f32 to vector<2x8x256xf32>
    %32 = arith.select %29, %30, %31 : vector<2x8x256xi1>, vector<2x8x256xf32>
    %33 = arith.mulf %27, %32 : vector<2x8x256xf32>
    %c1_i32_11 = arith.constant 1 : i32
    %34 = vector.broadcast %c1_i32_11 : i32 to vector<2x8x256xi32>
    %35 = arith.cmpi sle, %11, %34 : vector<2x8x256xi32>
    %c3_i32 = arith.constant 3 : i32
    %36 = vector.broadcast %c3_i32 : i32 to vector<2x8x256xi32>
    %37 = arith.cmpi sle, %11, %36 : vector<2x8x256xi32>
    %38 = arith.select %37, %33, %16 : vector<2x8x256xi1>, vector<2x8x256xf32>
    %39 = arith.select %35, %26, %38 : vector<2x8x256xi1>, vector<2x8x256xf32>
    %40 = vector.extract_strided_slice %39 {offsets = [0, 0, 0], sizes = [1, 8, 256], strides = [1, 1, 1]} : vector<2x8x256xf32> to vector<1x8x256xf32>
    %41 = vector.shape_cast %40 : vector<1x8x256xf32> to vector<8x256xf32>
    %42 = tpu.transpose %41, [1, 0] : vector<8x256xf32> -> vector<256x8xf32>
    %c0_12 = arith.constant 0 : index
    %c0_13 = arith.constant 0 : index
    %c0_14 = arith.constant 0 : index
    %c0_15 = arith.constant 0 : index
    %43 = vector.load %arg4[%c0_12, %c0_13, %c0_14, %c0_15] : memref<2x1x256x8xf32, #tpu.memory_space<vmem>>, vector<1x1x256x8xf32>
    %44 = vector.shape_cast %43 : vector<1x1x256x8xf32> to vector<256x8xf32>
    %45 = vector.shape_cast %42 : vector<256x8xf32> to vector<1x1x256x8xf32>
    tpu.vector_store %arg4[%c0_12, %c0_13, %c0_14, %c0_15], %45 {strides = array<i32>} : memref<2x1x256x8xf32, #tpu.memory_space<vmem>>, vector<1x1x256x8xf32>,
    %46 = vector.extract_strided_slice %39 {offsets = [1, 0, 0], sizes = [1, 8, 256], strides = [1, 1, 1]} : vector<2x8x256xf32> to vector<1x8x256xf32>
    %47 = vector.shape_cast %46 : vector<1x8x256xf32> to vector<8x256xf32>
    %48 = tpu.transpose %47, [1, 0] : vector<8x256xf32> -> vector<256x8xf32>
    %c1 = arith.constant 1 : index
    %c0_16 = arith.constant 0 : index
    %c0_17 = arith.constant 0 : index
    %c0_18 = arith.constant 0 : index
    %49 = vector.load %arg4[%c1, %c0_16, %c0_17, %c0_18] : memref<2x1x256x8xf32, #tpu.memory_space<vmem>>, vector<1x1x256x8xf32>
    %50 = vector.shape_cast %49 : vector<1x1x256x8xf32> to vector<256x8xf32>
    %51 = vector.shape_cast %48 : vector<256x8xf32> to vector<1x1x256x8xf32>
    tpu.vector_store %arg4[%c1, %c0_16, %c0_17, %c0_18], %51 {strides = array<i32>} : memref<2x1x256x8xf32, #tpu.memory_space<vmem>>, vector<1x1x256x8xf32>,
    return
  }
  func.func @transform_0(%arg0: i32, %arg1: i32) -> (i32, i32) {
    %c0_i32 = arith.constant 0 : i32
    %c0_i32_0 = arith.constant 0 : i32
    %c0_i32_1 = arith.constant 0 : i32
    return %c0_i32, %c0_i32_0 : i32, i32
  }
  func.func @transform_1(%arg0: i32, %arg1: i32) -> (i32, i32, i32, i32) {
    %c0_i32 = arith.constant 0 : i32
    %c0_i32_0 = arith.constant 0 : i32
    %c0_i32_1 = arith.constant 0 : i32
    return %arg1, %arg0, %c0_i32, %c0_i32_0 : i32, i32, i32, i32
  }
  func.func @transform_2(%arg0: i32, %arg1: i32) -> (i32, i32, i32, i32) {
    %c0_i32 = arith.constant 0 : i32
    %c0_i32_0 = arith.constant 0 : i32
    %c0_i32_1 = arith.constant 0 : i32
    return %arg1, %arg0, %c0_i32, %c0_i32_0 : i32, i32, i32, i32
  }
}

</mosaic_0001>

<bundles_post_ra>
// kernel: tpu_custom_call.1
= control target key start
LH: loop header
LB: loop body
LE: loop exit
PB: predicated region body
PF: predicated region fallthrough
CT: control target
= control target key end

     0   :  { %7 = vsyncpa [#allocation3], 0  ;;  %s1591_s0 = inlined_call_operand.hbm [shape: f32[2,256], index: 0, kind: input, shape index: {}]   ;;  %s1592_s1 = inlined_call_operand.hbm [shape: f32[2,2,8,256], index: 1, kind: input, shape index: {}]   ;;  %s1593_s2 = inlined_call_operand.vmem [shape: f32[2,2,256,8], index: 2, kind: output, shape index: {}]  }
   0x1   :  { %8 = vsyncpa [#allocation5], 0 }
   0x2   :  { %10 = vsyncpa [#allocation5 + $0x1], 0  ;;  %s1159_s9 = smov 0   ;;  %s1161_s10 = smov 0  }
   0x3   :  { %s1163_s11 = smov 0   ;;  %s1165_s12 = smov 0  }
   0x4   :  { %s1167_s13 = smov 0   ;;  %s1169_s14 = smov 0  }
   0x5 LB: > { %s880_s15 = sadd.s32 4294967295, %s1137_s14   ;;  %s58_s16 = sadd.s32 1, %s1125_s11  ;;  %s1137_s14 = sphi %s1169_s14, %s16_s14   ;;  %s1133_s13 = sphi %s1167_s13, %s1609_s13   ;;  %s1129_s12 = sphi %s1165_s12, %s1608_s12   ;;  %s1125_s11 = sphi %s1163_s11, %s1607_s11   ;;  %s1121_s10 = sphi %s1161_s10, %s1606_s10   ;;  %s1117_s9 = sphi %s1159_s9, %s1605_s9  }
   0x6   : > { %p65_p0 = scmp.ne.s32.totalorder %s1125_s11, %s1121_s10  ;;  %p66_p1 = scmp.eq.s32.totalorder %s1137_s14, 0 }
   0x7   : > { %p71_p2 = scmp.ne.s32.totalorder %s1121_s10, %s1117_s9  ;;  %p1193_p3 = scmp.eq.s32.totalorder %s880_s15, 0 }
   0x8   : > { %p1197_p4 = por %p66_p1, %p65_p0  ;;  %p97_p5 = scmp.eq.s32.totalorder %s880_s15, 1 }
   0x9   : > { %p1203_p6 = por %p1193_p3, %p71_p2  ;;  %p882_p7 = scmp.ge.s32.totalorder %s1137_s14, 1 }
   0xa   : > { %p1208_p8 = por %p97_p5, %p65_p0  ;;  %p110_p9 = scmp.lt.s32.totalorder %s1137_s14, 3 }
   0xb   : > { %s1598_s19 = scalar_select %p1203_p6, 1, 0 }
   0xc   : > { %s1599_s20 = scalar_select %p1208_p8, 1, 0 }
   0xd   : > { %p1213_p10 = pnand %p882_p7, %p110_p9  ;;  %s1139_s22 = smov [#allocation2]  }
   0xe   : > { %s123_s23 = sshll.u32 %s1139_s22, 4  ;;  %p950_p12 = scmp.lt.s32.totalorder %s1137_s14, 2  ;;  %s124_s23 = int_to_ptr.vmem [resolvable:$true] %s123_s23 }
   0xf   : > { %s1600_s21 = scalar_select %p1213_p10, 1, 0 }
  0x10   : > { %p941_p11 = pneg %p1213_p10  ;;  %s134_s24 = sand.u32 1, %s1125_s11  }
  0x11   : > { %p1225_p0 = pnand %p950_p12, %p1197_p4  ;;  %s1040_s26 = scalar_lea.vmem %s124_s23, 64 }
  0x12   : > { %p942_p13 = pnand %p941_p11, %p1193_p3  ;;  %p1041_p2 = scmp.ne.s32.totalorder %s124_s23, %s1040_s26 }
  0x13   : > { %p1048_p9 = scmp.lt.s32.totalorder %s124_s23, %s124_s23  ;;  %p1049_p8 = scmp.lt.s32.totalorder %s1040_s26, %s1040_s26 }
  0x14   : > { %p1031_p1 = pneg %p942_p13 }
  0x15   : > { %p1050_p6 = por %p1049_p8, %p1048_p9 }
  0x16   : > { %p1043_p5 = pnand %p1041_p2, %p1031_p1 }
  0x18   : > { %p1044_p7 = pneg %p1043_p5 }
  0x1a   : > { %p1051_p10 = pnand %p1050_p6, %p1044_p7 }
  0x1c   : > { %1054 = shalt.err (!%p1051_p10)
}
  0x1d   : > { %944 = dma.hbm_to_vmem [thread:$0]  (!%p942_p13), %s1591_s0, 64, %s124_s23, [#allocation3]  }
  0x1e   : > { %s28_s29 = sadd.s32 1, %s1133_s13  ;;  %s885_s30 = sshll.u32 %s134_s24, 5 }
  0x1f   : > { %p30_p4 = scmp.ge.s32.totalorder %s28_s29, 2  ;;  %s933_s3 = sshll.u32 %s1133_s13, 8 }
  0x20   : > { %s138_s4 = scalar_lea.vmem [#allocation4], %s885_s30  ;;  %s147_s8 = scalar_lea.hbm %s1592_s1, %s933_s3 }
  0x21   : > { %s148_s5 = sshll.u32 %s138_s4, 4  ;;  %s1611_s29 = smov (%p30_p4, %s28_s29), 0  ;;  %s149_s5 = int_to_ptr.vmem [resolvable:$true] %s148_s5 }
  0x22   : > { %s54_s9 = ssub.s32 %s1133_s13, %s1611_s29  ;;  %s135_s18 = scalar_lea.sflag [#allocation5], %s134_s24 }
  0x23   : > { %p56_p6 = scmp.eq.s32.totalorder %s54_s9, 0  ;;  %p1057_p8 = pneg %p1225_p0 }
  0x24   : > { %s1068_s22 = scalar_lea.vmem %s149_s5, 512  ;;  %s1140_s23 = smov [#allocation4]  }
  0x25   : > { %s1244_s15 = scalar_select %p56_p6, %s1125_s11, %s58_s16  }
  0x26   : > { %p1069_p10 = scmp.ne.s32.totalorder %s149_s5, %s1068_s22  ;;  %s1073_s26 = sshll.u32 %s1140_s23, 4  ;;  %s1074_s26 = int_to_ptr.vmem [resolvable:$false] %s1073_s26 }
  0x27   : > { %s1075_s27 = scalar_lea.vmem %s1074_s26, 1024  ;;  %p1076_p13 = scmp.lt.s32.totalorder %s149_s5, %s1074_s26 }
  0x28   : > { %p1071_p11 = pnand %p1069_p10, %p1057_p8  ;;  %p1077_p1 = scmp.lt.s32.totalorder %s1075_s27, %s1068_s22 }
  0x2a   : > { %p1072_p12 = pneg %p1071_p11  ;;  %p1078_p2 = por %p1077_p1, %p1076_p13 }
  0x2c   : > { %p1079_p5 = pnand %p1078_p2, %p1072_p12 }
  0x2e   : > { %1082 = shalt.err (!%p1079_p5)
}
  0x2f   : > { %s1141_s28 = smov 512   ;;  %s1142_s16 = smov 256  }
  0x30   : > { %s1143_s30 = smov 16   ;;  %p1602_p7 = scmp.ne.s32.totalorder %s1600_s21, 0 }
  0x31   : > { %948 = dma.hbm_to_vmem [thread:$0]  (!%p1225_p0), %s147_s8, 512, %s149_s5, %s135_s18, %s1141_s28, %s1142_s16, %s1143_s30  }
  0x32   : > { %160 = sbr.rel (%p1602_p7) target bundleno = 358 (0x166), region = 28 }
  0x37   : > { %1108 = dma.done.wait (%p1193_p3), [#allocation3], 64  }
  0x38   : > { %1110 = vsyncadd (%p1193_p3), [#allocation3], 4294967232  ;;  %s1257_s24 = sand.u32 1, %s1121_s10   ;;  %p1603_p0 = scmp.ne.s32.totalorder %s1598_s19, 0 }
  0x39   : > { %s890_s3 = sshll.u32 %s1257_s24, 5  ;;  %s167_s4 = scalar_lea.sflag [#allocation5], %s1257_s24 }
  0x3a   : > { %s1261_s6 = scalar_lea.vmem [#allocation4], %s890_s3 }
  0x3b   : > { %1112 = dma.done.wait (%p1603_p0), %s167_s4, 512  }
  0x3c   : > { %1114 = vsyncadd (%p1603_p0), %s167_s4, 4294966784  ;;  %v200_v0 = vlaneseq  ;;  %v194_v4 = vld [vmem:[%s1261_s6 + $0x10] sm:$0xff]  ;;  %v192_v5 = vld [vmem:[%s1261_s6] sm:$0xff]  ;;  %p196_p3 = scmp.eq.s32.totalorder %s1129_s12, 1  ;;  %s891_s21 = sshll.u32 %s1257_s24, 9  ;;  %vm364_vm4 = vcmask 64512  }
  0x3d   : > { %v199_v6 = vld [vmem:[#allocation2] sm:$0xf]  ;;  %v894_v7 = vmul.f32 -1.442695, %v194_v4  ;;  %v892_v9 = vmul.f32 -1.442695, %v192_v5 }
  0x3e   : > { %v1267_v1 = vshrl.u32 %v200_v0, 7  ;;  %v278_v16 = vmul.f32 1.442695, %v194_v4  ;;  %v274_v17 = vmul.f32 1.442695, %v192_v5  ;;  %v195_v44 = vld [vmem:[%s1261_s6 + $0x18] sm:$0xff] }
  0x3f   : > { %1005 = vpow2.f32 %v894_v7  ;;  %s197_s17 = scalar_select %p196_p3, 19.0, 12.0  ;;  %v193_v45 = vld [vmem:[%s1261_s6 + $0x8] sm:$0xff]  ;;  %v895_v46 = vmul.f32 -1.442695, %v195_v44 }
  0x40   : > { %v234_v2 = vsub.s32 2, %v1267_v1  ;;  %v252_v3 = vsub.s32 3, %v1267_v1  ;;  %v230_v8 = vsub.s32 0, %v1267_v1  ;;  %v248_v11 = vsub.s32 1, %v1267_v1  ;;  %s198_s19 = scalar_select %p196_p3, 36.0, 16.0 }
  0x41   : > { %1007 = vpow2.f32 %v892_v9  ;;  %vm226_vm0 = vcmp.eq.s32.totalorder %v1267_v1, 0  ;;  %vm282_vm1 = vcmp.eq.s32.totalorder %v1267_v1, 2  ;;  %v283_v24 = vstv %s197_s17  ;;  %s1307_s25 = scalar_lea.vmem [#allocation6], %s891_s21  ;;  %p1604_p9 = scmp.ne.s32.totalorder %s1599_s20, 0 }
  0x42   : > { %v235_v10 = vrot.slane %v199_v6, %v234_v2  ;;  %v253_v12 = vrot.slane %v199_v6, %v252_v3  ;;  %1009 = vpow2.f32 %v278_v16  ;;  %v231_v22 = vrot.slane %v199_v6, %v230_v8  ;;  %s934_s5 = sshll.u32 (%p1604_p9), %s1129_s12, 8 }
  0x43   : > { %1011 = vpow2.f32 %v274_v17  ;;  %v249_v23 = vrot.slane %v199_v6, %v248_v11  ;;  %v284_v25 = vstv %s198_s19  ;;  %vm291_vm2 = vcmp.le.s32.totalorder %v1267_v1, 3  ;;  %s1446_s9 = scalar_lea.vmem (%p1604_p9), %s1593_s2, %s934_s5 }
  0x44   : > { %v245_v13 = vrot.slane %v235_v10, %v230_v8  ;;  %v263_v14 = vrot.slane %v253_v12, %v248_v11  ;;  %v241_v26 = vrot.slane %v231_v22, %v230_v8  ;;  %v285_v29 = vsel %vm282_vm1, %v283_v24, %v284_v25 }
  0x45   : > { %v259_v27 = vrot.slane %v249_v23, %v248_v11  ;;  %vm290_vm3 = vcmp.le.s32.totalorder %v1267_v1, 1  ;;  %v893_v47 = vmul.f32 -1.442695, %v193_v45  ;;  %v280_v51 = vmul.f32 1.442695, %v195_v44 }
  0x46   : > { %v1278_v15 = vsel %vm226_vm0, %v245_v13, %v263_v14  ;;  %v276_v53 = vmul.f32 1.442695, %v193_v45 }
  0x47   : > { %v264_v31 = vsel %vm226_vm0, %v241_v26, %v259_v27 }
  0x4c   : > { %v1006_v18 = vpop.eup %1005 }
  0x4d   : > { %v216_v19 = vadd.f32 1.0, %v1006_v18 }
  0x4e   : > { %v1008_v20 = vpop.eup %1007 }
  0x4f   : > { %1013 = vrcp.f32 %v216_v19  ;;  %v214_v21 = vadd.f32 1.0, %v1008_v20  ;;  %v1010_v28 = vpop.eup %1009 }
  0x50   : > { %v1012_v30 = vpop.eup %1011  ;;  %v288_v32 = vmul.f32 %v1010_v28, %v285_v29 }
  0x51   : > { %1015 = vrcp.f32 %v214_v21  ;;  %v286_v34 = vmul.f32 %v1012_v30, %v285_v29 }
  0x52   : > { %1017 = vpow2.f32 %v895_v46 }
  0x53   : > { %1019 = vpow2.f32 %v893_v47 }
  0x5c   : > { %v1014_v33 = vpop.eup %1013 }
  0x5d   : > { %v268_v35 = vadd.f32 %v1014_v33, %v264_v31  ;;  %v294_v37 = vsel %vm291_vm2, %v288_v32, %v1014_v33 }
  0x5e   : > { %v1016_v36 = vpop.eup %1015 }
  0x5f   : > { %v272_v38 = vmul.f32 32.0, %v268_v35  ;;  %v266_v39 = vadd.f32 %v1016_v36, %v264_v31  ;;  %v292_v40 = vsel %vm291_vm2, %v286_v34, %v1016_v36  ;;  %v1018_v48 = vpop.eup %1017 }
  0x60   : > { %v1020_v49 = vpop.eup %1019  ;;  %v217_v50 = vadd.f32 1.0, %v1018_v48 }
  0x61   : > { %v298_v41 = vsel %vm290_vm3, %v272_v38, %v294_v37  ;;  %v270_v42 = vmul.f32 32.0, %v266_v39  ;;  %v215_v52 = vadd.f32 1.0, %v1020_v49 }
  0x62   : > { %397 = vxpose.xlu1.b32.start.end [1/1] (short) %v298_v41, 128  ;;  %1021 = vrcp.f32 %v217_v50 }
  0x63   : > { %v296_v43 = vsel %vm290_vm3, %v270_v42, %v292_v40  ;;  %1023 = vpow2.f32 %v280_v51 }
  0x64   : > { %300 = vxpose.xlu0.b32.start.end [1/1] (short) %v296_v43, 128  ;;  %1025 = vrcp.f32 %v215_v52 }
  0x65   : > { %1027 = vpow2.f32 %v276_v53 }
  0x6f   : > { %v1022_v54 = vpop.eup %1021 }
  0x70   : > { %v1024_v55 = vpop.eup %1023  ;;  %v269_v58 = vadd.f32 %v1022_v54, %v1278_v15 }
  0x71   : > { %v1026_v56 = vpop.eup %1025  ;;  %v289_v59 = vmul.f32 %v1024_v55, %v285_v29 }
  0x72   : > { %v1028_v57 = vpop.eup %1027  ;;  %v267_v60 = vadd.f32 %v1026_v56, %v1278_v15  ;;  %v273_v62 = vmul.f32 32.0, %v269_v58 }
  0x73   : > { %v287_v61 = vmul.f32 %v1028_v57, %v285_v29  ;;  %v295_v63 = vsel %vm291_vm2, %v289_v59, %v1022_v54 }
  0x74   : > { %v271_v0 = vmul.f32 32.0, %v267_v60  ;;  %v299_v3 = vsel %vm290_vm3, %v273_v62, %v295_v63 }
  0x75   : > { %v293_v2 = vsel %vm291_vm2, %v287_v61, %v1026_v56 }
  0x76   : > { %v297_v4 = vsel %vm290_vm3, %v271_v0, %v293_v2 }
  0x9f   : > { %429 = vxpose.xlu1.b32.start.end [1/1] (short) %v299_v3, 128 }
  0xa1   : > { %332 = vxpose.xlu0.b32.start.end [1/1] (short) %v297_v4, 128 }
  0xde   : > { %v413_v5 = vpop.trf.xlu1 }
  0xdf   : > { %896 = vst.msk [vmem:[%s1307_s25 + $0x100] sm:$0xff] %vm364_vm4, %v413_v5 }
  0xe0   : > { %v316_v1 = vpop.trf.xlu0 }
  0xe1   : > { %365 = vst.msk [vmem:[%s1307_s25] sm:$0xff] %vm364_vm4, %v316_v1 }
  0xe2   : > { %v414_v6 = vpop.trf.xlu1 }
  0xe3   : > { %897 = vst.msk [vmem:[%s1307_s25 + $0x108] sm:$0xff] %vm364_vm4, %v414_v6 }
  0xe4   : > { %v317_v7 = vpop.trf.xlu0 }
  0xe5   : > { %366 = vst.msk [vmem:[%s1307_s25 + $0x8] sm:$0xff] %vm364_vm4, %v317_v7 }
  0xe6   : > { %v415_v8 = vpop.trf.xlu1 }
  0xe7   : > { %898 = vst.msk [vmem:[%s1307_s25 + $0x110] sm:$0xff] %vm364_vm4, %v415_v8 }
  0xe8   : > { %v318_v9 = vpop.trf.xlu0  ;;  %v661_v5 = vld [vmem:[%s1307_s25] sm:$0xff] (%p1604_p9) }
  0xe9   : > { %367 = vst.msk [vmem:[%s1307_s25 + $0x10] sm:$0xff] %vm364_vm4, %v318_v9  ;;  %662 = vst [vmem:[%s1446_s9] sm:$0xff] (%p1604_p9), %v661_v5 }
  0xea   : > { %v416_v10 = vpop.trf.xlu1 }
  0xeb   : > { %899 = vst.msk [vmem:[%s1307_s25 + $0x118] sm:$0xff] %vm364_vm4, %v416_v10 }
  0xec   : > { %v319_v11 = vpop.trf.xlu0  ;;  %v663_v1 = vld [vmem:[%s1307_s25 + $0x8] sm:$0xff] (%p1604_p9) }
  0xed   : > { %368 = vst.msk [vmem:[%s1307_s25 + $0x18] sm:$0xff] %vm364_vm4, %v319_v11  ;;  %664 = vst [vmem:[%s1446_s9 + $0x8] sm:$0xff] (%p1604_p9), %v663_v1 }
  0xee   : > { %v417_v12 = vpop.trf.xlu1 }
  0xef   : > { %900 = vst.msk [vmem:[%s1307_s25 + $0x120] sm:$0xff] %vm364_vm4, %v417_v12 }
  0xf0   : > { %v320_v13 = vpop.trf.xlu0  ;;  %v665_v6 = vld [vmem:[%s1307_s25 + $0x10] sm:$0xff] (%p1604_p9) }
  0xf1   : > { %369 = vst.msk [vmem:[%s1307_s25 + $0x20] sm:$0xff] %vm364_vm4, %v320_v13  ;;  %666 = vst [vmem:[%s1446_s9 + $0x10] sm:$0xff] (%p1604_p9), %v665_v6 }
  0xf2   : > { %v418_v14 = vpop.trf.xlu1 }
  0xf3   : > { %901 = vst.msk [vmem:[%s1307_s25 + $0x128] sm:$0xff] %vm364_vm4, %v418_v14 }
  0xf4   : > { %v321_v15 = vpop.trf.xlu0  ;;  %v667_v7 = vld [vmem:[%s1307_s25 + $0x18] sm:$0xff] (%p1604_p9) }
  0xf5   : > { %370 = vst.msk [vmem:[%s1307_s25 + $0x28] sm:$0xff] %vm364_vm4, %v321_v15  ;;  %668 = vst [vmem:[%s1446_s9 + $0x18] sm:$0xff] (%p1604_p9), %v667_v7 }
  0xf6   : > { %v419_v16 = vpop.trf.xlu1 }
  0xf7   : > { %902 = vst.msk [vmem:[%s1307_s25 + $0x130] sm:$0xff] %vm364_vm4, %v419_v16 }
  0xf8   : > { %v322_v17 = vpop.trf.xlu0  ;;  %v669_v8 = vld [vmem:[%s1307_s25 + $0x20] sm:$0xff] (%p1604_p9) }
  0xf9   : > { %371 = vst.msk [vmem:[%s1307_s25 + $0x30] sm:$0xff] %vm364_vm4, %v322_v17  ;;  %670 = vst [vmem:[%s1446_s9 + $0x20] sm:$0xff] (%p1604_p9), %v669_v8 }
  0xfa   : > { %v420_v18 = vpop.trf.xlu1 }
  0xfb   : > { %903 = vst.msk [vmem:[%s1307_s25 + $0x138] sm:$0xff] %vm364_vm4, %v420_v18 }
  0xfc   : > { %v323_v19 = vpop.trf.xlu0  ;;  %v671_v9 = vld [vmem:[%s1307_s25 + $0x28] sm:$0xff] (%p1604_p9) }
  0xfd   : > { %372 = vst.msk [vmem:[%s1307_s25 + $0x38] sm:$0xff] %vm364_vm4, %v323_v19  ;;  %672 = vst [vmem:[%s1446_s9 + $0x28] sm:$0xff] (%p1604_p9), %v671_v9 }
  0xfe   : > { %v421_v20 = vpop.trf.xlu1 }
  0xff   : > { %904 = vst.msk [vmem:[%s1307_s25 + $0x140] sm:$0xff] %vm364_vm4, %v421_v20 }
 0x100   : > { %v324_v21 = vpop.trf.xlu0  ;;  %v673_v10 = vld [vmem:[%s1307_s25 + $0x30] sm:$0xff] (%p1604_p9) }
 0x101   : > { %373 = vst.msk [vmem:[%s1307_s25 + $0x40] sm:$0xff] %vm364_vm4, %v324_v21  ;;  %674 = vst [vmem:[%s1446_s9 + $0x30] sm:$0xff] (%p1604_p9), %v673_v10 }
 0x102   : > { %v422_v22 = vpop.trf.xlu1 }
 0x103   : > { %905 = vst.msk [vmem:[%s1307_s25 + $0x148] sm:$0xff] %vm364_vm4, %v422_v22 }
 0x104   : > { %v325_v23 = vpop.trf.xlu0  ;;  %v675_v11 = vld [vmem:[%s1307_s25 + $0x38] sm:$0xff] (%p1604_p9) }
 0x105   : > { %374 = vst.msk [vmem:[%s1307_s25 + $0x48] sm:$0xff] %vm364_vm4, %v325_v23  ;;  %676 = vst [vmem:[%s1446_s9 + $0x38] sm:$0xff] (%p1604_p9), %v675_v11 }
 0x106   : > { %v423_v24 = vpop.trf.xlu1 }
 0x107   : > { %906 = vst.msk [vmem:[%s1307_s25 + $0x150] sm:$0xff] %vm364_vm4, %v423_v24 }
 0x108   : > { %v326_v25 = vpop.trf.xlu0  ;;  %v677_v12 = vld [vmem:[%s1307_s25 + $0x40] sm:$0xff] (%p1604_p9) }
 0x109   : > { %375 = vst.msk [vmem:[%s1307_s25 + $0x50] sm:$0xff] %vm364_vm4, %v326_v25  ;;  %678 = vst [vmem:[%s1446_s9 + $0x40] sm:$0xff] (%p1604_p9), %v677_v12 }
 0x10a   : > { %v424_v26 = vpop.trf.xlu1 }
 0x10b   : > { %907 = vst.msk [vmem:[%s1307_s25 + $0x158] sm:$0xff] %vm364_vm4, %v424_v26 }
 0x10c   : > { %v327_v27 = vpop.trf.xlu0  ;;  %v679_v13 = vld [vmem:[%s1307_s25 + $0x48] sm:$0xff] (%p1604_p9) }
 0x10d   : > { %376 = vst.msk [vmem:[%s1307_s25 + $0x58] sm:$0xff] %vm364_vm4, %v327_v27  ;;  %680 = vst [vmem:[%s1446_s9 + $0x48] sm:$0xff] (%p1604_p9), %v679_v13 }
 0x10e   : > { %v425_v28 = vpop.trf.xlu1 }
 0x10f   : > { %908 = vst.msk [vmem:[%s1307_s25 + $0x160] sm:$0xff] %vm364_vm4, %v425_v28 }
 0x110   : > { %v328_v29 = vpop.trf.xlu0  ;;  %v681_v14 = vld [vmem:[%s1307_s25 + $0x50] sm:$0xff] (%p1604_p9) }
 0x111   : > { %377 = vst.msk [vmem:[%s1307_s25 + $0x60] sm:$0xff] %vm364_vm4, %v328_v29  ;;  %682 = vst [vmem:[%s1446_s9 + $0x50] sm:$0xff] (%p1604_p9), %v681_v14 }
 0x112   : > { %v426_v30 = vpop.trf.xlu1 }
 0x113   : > { %909 = vst.msk [vmem:[%s1307_s25 + $0x168] sm:$0xff] %vm364_vm4, %v426_v30 }
 0x114   : > { %v329_v31 = vpop.trf.xlu0  ;;  %v683_v15 = vld [vmem:[%s1307_s25 + $0x58] sm:$0xff] (%p1604_p9) }
 0x115   : > { %378 = vst.msk [vmem:[%s1307_s25 + $0x68] sm:$0xff] %vm364_vm4, %v329_v31  ;;  %684 = vst [vmem:[%s1446_s9 + $0x58] sm:$0xff] (%p1604_p9), %v683_v15 }
 0x116   : > { %v427_v32 = vpop.trf.xlu1 }
 0x117   : > { %910 = vst.msk [vmem:[%s1307_s25 + $0x170] sm:$0xff] %vm364_vm4, %v427_v32 }
 0x118   : > { %v330_v33 = vpop.trf.xlu0  ;;  %v685_v16 = vld [vmem:[%s1307_s25 + $0x60] sm:$0xff] (%p1604_p9) }
 0x119   : > { %379 = vst.msk [vmem:[%s1307_s25 + $0x70] sm:$0xff] %vm364_vm4, %v330_v33  ;;  %686 = vst [vmem:[%s1446_s9 + $0x60] sm:$0xff] (%p1604_p9), %v685_v16 }
 0x11a   : > { %v428_v34 = vpop.trf.xlu1 }
 0x11b   : > { %911 = vst.msk [vmem:[%s1307_s25 + $0x178] sm:$0xff] %vm364_vm4, %v428_v34 }
 0x11c   : > { %v331_v35 = vpop.trf.xlu0  ;;  %v687_v17 = vld [vmem:[%s1307_s25 + $0x68] sm:$0xff] (%p1604_p9) }
 0x11d   : > { %380 = vst.msk [vmem:[%s1307_s25 + $0x78] sm:$0xff] %vm364_vm4, %v331_v35  ;;  %688 = vst [vmem:[%s1446_s9 + $0x68] sm:$0xff] (%p1604_p9), %v687_v17 }
 0x11e   : > { %v445_v36 = vpop.trf.xlu1 }
 0x11f   : > { %912 = vst.msk [vmem:[%s1307_s25 + $0x180] sm:$0xff] %vm364_vm4, %v445_v36  ;;  %v725_v36 = vld [vmem:[%s1307_s25 + $0x100] sm:$0xff] (%p1604_p9) }
 0x120   : > { %v348_v37 = vpop.trf.xlu0  ;;  %v689_v18 = vld [vmem:[%s1307_s25 + $0x70] sm:$0xff] (%p1604_p9)  ;;  %726 = vst [vmem:[%s1446_s9 + $0x200] sm:$0xff] (%p1604_p9), %v725_v36 }
 0x121   : > { %381 = vst.msk [vmem:[%s1307_s25 + $0x80] sm:$0xff] %vm364_vm4, %v348_v37  ;;  %690 = vst [vmem:[%s1446_s9 + $0x70] sm:$0xff] (%p1604_p9), %v689_v18  ;;  %v727_v37 = vld [vmem:[%s1307_s25 + $0x108] sm:$0xff] (%p1604_p9) }
 0x122   : > { %v446_v38 = vpop.trf.xlu1  ;;  %728 = vst [vmem:[%s1446_s9 + $0x208] sm:$0xff] (%p1604_p9), %v727_v37 }
 0x123   : > { %913 = vst.msk [vmem:[%s1307_s25 + $0x188] sm:$0xff] %vm364_vm4, %v446_v38  ;;  %v729_v38 = vld [vmem:[%s1307_s25 + $0x110] sm:$0xff] (%p1604_p9) }
 0x124   : > { %v349_v39 = vpop.trf.xlu0  ;;  %v691_v19 = vld [vmem:[%s1307_s25 + $0x78] sm:$0xff] (%p1604_p9)  ;;  %730 = vst [vmem:[%s1446_s9 + $0x210] sm:$0xff] (%p1604_p9), %v729_v38 }
 0x125   : > { %382 = vst.msk [vmem:[%s1307_s25 + $0x88] sm:$0xff] %vm364_vm4, %v349_v39  ;;  %692 = vst [vmem:[%s1446_s9 + $0x78] sm:$0xff] (%p1604_p9), %v691_v19  ;;  %v731_v39 = vld [vmem:[%s1307_s25 + $0x118] sm:$0xff] (%p1604_p9) }
 0x126   : > { %v447_v40 = vpop.trf.xlu1  ;;  %732 = vst [vmem:[%s1446_s9 + $0x218] sm:$0xff] (%p1604_p9), %v731_v39 }
 0x127   : > { %914 = vst.msk [vmem:[%s1307_s25 + $0x190] sm:$0xff] %vm364_vm4, %v447_v40  ;;  %v733_v40 = vld [vmem:[%s1307_s25 + $0x120] sm:$0xff] (%p1604_p9) }
 0x128   : > { %v350_v41 = vpop.trf.xlu0  ;;  %v693_v20 = vld [vmem:[%s1307_s25 + $0x80] sm:$0xff] (%p1604_p9)  ;;  %734 = vst [vmem:[%s1446_s9 + $0x220] sm:$0xff] (%p1604_p9), %v733_v40 }
 0x129   : > { %383 = vst.msk [vmem:[%s1307_s25 + $0x90] sm:$0xff] %vm364_vm4, %v350_v41  ;;  %694 = vst [vmem:[%s1446_s9 + $0x80] sm:$0xff] (%p1604_p9), %v693_v20  ;;  %v735_v41 = vld [vmem:[%s1307_s25 + $0x128] sm:$0xff] (%p1604_p9) }
 0x12a   : > { %v448_v42 = vpop.trf.xlu1  ;;  %736 = vst [vmem:[%s1446_s9 + $0x228] sm:$0xff] (%p1604_p9), %v735_v41 }
 0x12b   : > { %915 = vst.msk [vmem:[%s1307_s25 + $0x198] sm:$0xff] %vm364_vm4, %v448_v42  ;;  %v737_v42 = vld [vmem:[%s1307_s25 + $0x130] sm:$0xff] (%p1604_p9) }
 0x12c   : > { %v351_v43 = vpop.trf.xlu0  ;;  %v695_v21 = vld [vmem:[%s1307_s25 + $0x88] sm:$0xff] (%p1604_p9)  ;;  %738 = vst [vmem:[%s1446_s9 + $0x230] sm:$0xff] (%p1604_p9), %v737_v42 }
 0x12d   : > { %384 = vst.msk [vmem:[%s1307_s25 + $0x98] sm:$0xff] %vm364_vm4, %v351_v43  ;;  %696 = vst [vmem:[%s1446_s9 + $0x88] sm:$0xff] (%p1604_p9), %v695_v21  ;;  %v739_v43 = vld [vmem:[%s1307_s25 + $0x138] sm:$0xff] (%p1604_p9) }
 0x12e   : > { %v449_v44 = vpop.trf.xlu1  ;;  %740 = vst [vmem:[%s1446_s9 + $0x238] sm:$0xff] (%p1604_p9), %v739_v43 }
 0x12f   : > { %916 = vst.msk [vmem:[%s1307_s25 + $0x1a0] sm:$0xff] %vm364_vm4, %v449_v44  ;;  %v741_v44 = vld [vmem:[%s1307_s25 + $0x140] sm:$0xff] (%p1604_p9) }
 0x130   : > { %v352_v45 = vpop.trf.xlu0  ;;  %v697_v22 = vld [vmem:[%s1307_s25 + $0x90] sm:$0xff] (%p1604_p9)  ;;  %742 = vst [vmem:[%s1446_s9 + $0x240] sm:$0xff] (%p1604_p9), %v741_v44 }
 0x131   : > { %385 = vst.msk [vmem:[%s1307_s25 + $0xa0] sm:$0xff] %vm364_vm4, %v352_v45  ;;  %698 = vst [vmem:[%s1446_s9 + $0x90] sm:$0xff] (%p1604_p9), %v697_v22  ;;  %v743_v45 = vld [vmem:[%s1307_s25 + $0x148] sm:$0xff] (%p1604_p9) }
 0x132   : > { %v450_v46 = vpop.trf.xlu1  ;;  %744 = vst [vmem:[%s1446_s9 + $0x248] sm:$0xff] (%p1604_p9), %v743_v45 }
 0x133   : > { %917 = vst.msk [vmem:[%s1307_s25 + $0x1a8] sm:$0xff] %vm364_vm4, %v450_v46  ;;  %v745_v46 = vld [vmem:[%s1307_s25 + $0x150] sm:$0xff] (%p1604_p9) }
 0x134   : > { %v353_v47 = vpop.trf.xlu0  ;;  %v699_v23 = vld [vmem:[%s1307_s25 + $0x98] sm:$0xff] (%p1604_p9)  ;;  %746 = vst [vmem:[%s1446_s9 + $0x250] sm:$0xff] (%p1604_p9), %v745_v46 }
 0x135   : > { %386 = vst.msk [vmem:[%s1307_s25 + $0xa8] sm:$0xff] %vm364_vm4, %v353_v47  ;;  %700 = vst [vmem:[%s1446_s9 + $0x98] sm:$0xff] (%p1604_p9), %v699_v23  ;;  %v747_v47 = vld [vmem:[%s1307_s25 + $0x158] sm:$0xff] (%p1604_p9) }
 0x136   : > { %v451_v48 = vpop.trf.xlu1  ;;  %748 = vst [vmem:[%s1446_s9 + $0x258] sm:$0xff] (%p1604_p9), %v747_v47 }
 0x137   : > { %918 = vst.msk [vmem:[%s1307_s25 + $0x1b0] sm:$0xff] %vm364_vm4, %v451_v48  ;;  %v749_v48 = vld [vmem:[%s1307_s25 + $0x160] sm:$0xff] (%p1604_p9) }
 0x138   : > { %v354_v49 = vpop.trf.xlu0  ;;  %v701_v24 = vld [vmem:[%s1307_s25 + $0xa0] sm:$0xff] (%p1604_p9)  ;;  %750 = vst [vmem:[%s1446_s9 + $0x260] sm:$0xff] (%p1604_p9), %v749_v48 }
 0x139   : > { %387 = vst.msk [vmem:[%s1307_s25 + $0xb0] sm:$0xff] %vm364_vm4, %v354_v49  ;;  %702 = vst [vmem:[%s1446_s9 + $0xa0] sm:$0xff] (%p1604_p9), %v701_v24  ;;  %v751_v49 = vld [vmem:[%s1307_s25 + $0x168] sm:$0xff] (%p1604_p9) }
 0x13a   : > { %v452_v50 = vpop.trf.xlu1  ;;  %752 = vst [vmem:[%s1446_s9 + $0x268] sm:$0xff] (%p1604_p9), %v751_v49 }
 0x13b   : > { %919 = vst.msk [vmem:[%s1307_s25 + $0x1b8] sm:$0xff] %vm364_vm4, %v452_v50  ;;  %v753_v50 = vld [vmem:[%s1307_s25 + $0x170] sm:$0xff] (%p1604_p9) }
 0x13c   : > { %v355_v51 = vpop.trf.xlu0  ;;  %v703_v25 = vld [vmem:[%s1307_s25 + $0xa8] sm:$0xff] (%p1604_p9)  ;;  %754 = vst [vmem:[%s1446_s9 + $0x270] sm:$0xff] (%p1604_p9), %v753_v50 }
 0x13d   : > { %388 = vst.msk [vmem:[%s1307_s25 + $0xb8] sm:$0xff] %vm364_vm4, %v355_v51  ;;  %704 = vst [vmem:[%s1446_s9 + $0xa8] sm:$0xff] (%p1604_p9), %v703_v25  ;;  %v755_v51 = vld [vmem:[%s1307_s25 + $0x178] sm:$0xff] (%p1604_p9) }
 0x13e   : > { %v453_v52 = vpop.trf.xlu1  ;;  %756 = vst [vmem:[%s1446_s9 + $0x278] sm:$0xff] (%p1604_p9), %v755_v51 }
 0x13f   : > { %920 = vst.msk [vmem:[%s1307_s25 + $0x1c0] sm:$0xff] %vm364_vm4, %v453_v52  ;;  %v757_v52 = vld [vmem:[%s1307_s25 + $0x180] sm:$0xff] (%p1604_p9) }
 0x140   : > { %v356_v53 = vpop.trf.xlu0  ;;  %v705_v26 = vld [vmem:[%s1307_s25 + $0xb0] sm:$0xff] (%p1604_p9)  ;;  %758 = vst [vmem:[%s1446_s9 + $0x280] sm:$0xff] (%p1604_p9), %v757_v52 }
 0x141   : > { %389 = vst.msk [vmem:[%s1307_s25 + $0xc0] sm:$0xff] %vm364_vm4, %v356_v53  ;;  %706 = vst [vmem:[%s1446_s9 + $0xb0] sm:$0xff] (%p1604_p9), %v705_v26  ;;  %v759_v53 = vld [vmem:[%s1307_s25 + $0x188] sm:$0xff] (%p1604_p9) }
 0x142   : > { %v454_v54 = vpop.trf.xlu1  ;;  %760 = vst [vmem:[%s1446_s9 + $0x288] sm:$0xff] (%p1604_p9), %v759_v53 }
 0x143   : > { %921 = vst.msk [vmem:[%s1307_s25 + $0x1c8] sm:$0xff] %vm364_vm4, %v454_v54  ;;  %v761_v54 = vld [vmem:[%s1307_s25 + $0x190] sm:$0xff] (%p1604_p9) }
 0x144   : > { %v357_v55 = vpop.trf.xlu0  ;;  %v707_v27 = vld [vmem:[%s1307_s25 + $0xb8] sm:$0xff] (%p1604_p9)  ;;  %762 = vst [vmem:[%s1446_s9 + $0x290] sm:$0xff] (%p1604_p9), %v761_v54 }
 0x145   : > { %390 = vst.msk [vmem:[%s1307_s25 + $0xc8] sm:$0xff] %vm364_vm4, %v357_v55  ;;  %708 = vst [vmem:[%s1446_s9 + $0xb8] sm:$0xff] (%p1604_p9), %v707_v27  ;;  %v763_v55 = vld [vmem:[%s1307_s25 + $0x198] sm:$0xff] (%p1604_p9) }
 0x146   : > { %v455_v56 = vpop.trf.xlu1  ;;  %764 = vst [vmem:[%s1446_s9 + $0x298] sm:$0xff] (%p1604_p9), %v763_v55 }
 0x147   : > { %922 = vst.msk [vmem:[%s1307_s25 + $0x1d0] sm:$0xff] %vm364_vm4, %v455_v56  ;;  %v765_v56 = vld [vmem:[%s1307_s25 + $0x1a0] sm:$0xff] (%p1604_p9) }
 0x148   : > { %v358_v57 = vpop.trf.xlu0  ;;  %v709_v28 = vld [vmem:[%s1307_s25 + $0xc0] sm:$0xff] (%p1604_p9)  ;;  %766 = vst [vmem:[%s1446_s9 + $0x2a0] sm:$0xff] (%p1604_p9), %v765_v56 }
 0x149   : > { %391 = vst.msk [vmem:[%s1307_s25 + $0xd0] sm:$0xff] %vm364_vm4, %v358_v57  ;;  %710 = vst [vmem:[%s1446_s9 + $0xc0] sm:$0xff] (%p1604_p9), %v709_v28  ;;  %v767_v57 = vld [vmem:[%s1307_s25 + $0x1a8] sm:$0xff] (%p1604_p9) }
 0x14a   : > { %v456_v58 = vpop.trf.xlu1  ;;  %768 = vst [vmem:[%s1446_s9 + $0x2a8] sm:$0xff] (%p1604_p9), %v767_v57 }
 0x14b   : > { %923 = vst.msk [vmem:[%s1307_s25 + $0x1d8] sm:$0xff] %vm364_vm4, %v456_v58  ;;  %v769_v58 = vld [vmem:[%s1307_s25 + $0x1b0] sm:$0xff] (%p1604_p9) }
 0x14c   : > { %v359_v59 = vpop.trf.xlu0  ;;  %v711_v29 = vld [vmem:[%s1307_s25 + $0xc8] sm:$0xff] (%p1604_p9)  ;;  %770 = vst [vmem:[%s1446_s9 + $0x2b0] sm:$0xff] (%p1604_p9), %v769_v58 }
 0x14d   : > { %392 = vst.msk [vmem:[%s1307_s25 + $0xd8] sm:$0xff] %vm364_vm4, %v359_v59  ;;  %712 = vst [vmem:[%s1446_s9 + $0xc8] sm:$0xff] (%p1604_p9), %v711_v29  ;;  %v771_v59 = vld [vmem:[%s1307_s25 + $0x1b8] sm:$0xff] (%p1604_p9) }
 0x14e   : > { %v457_v60 = vpop.trf.xlu1  ;;  %772 = vst [vmem:[%s1446_s9 + $0x2b8] sm:$0xff] (%p1604_p9), %v771_v59 }
 0x14f   : > { %924 = vst.msk [vmem:[%s1307_s25 + $0x1e0] sm:$0xff] %vm364_vm4, %v457_v60  ;;  %v773_v60 = vld [vmem:[%s1307_s25 + $0x1c0] sm:$0xff] (%p1604_p9) }
 0x150   : > { %v360_v61 = vpop.trf.xlu0  ;;  %v713_v30 = vld [vmem:[%s1307_s25 + $0xd0] sm:$0xff] (%p1604_p9)  ;;  %774 = vst [vmem:[%s1446_s9 + $0x2c0] sm:$0xff] (%p1604_p9), %v773_v60 }
 0x151   : > { %393 = vst.msk [vmem:[%s1307_s25 + $0xe0] sm:$0xff] %vm364_vm4, %v360_v61  ;;  %714 = vst [vmem:[%s1446_s9 + $0xd0] sm:$0xff] (%p1604_p9), %v713_v30  ;;  %v775_v61 = vld [vmem:[%s1307_s25 + $0x1c8] sm:$0xff] (%p1604_p9) }
 0x152   : > { %v458_v62 = vpop.trf.xlu1  ;;  %776 = vst [vmem:[%s1446_s9 + $0x2c8] sm:$0xff] (%p1604_p9), %v775_v61 }
 0x153   : > { %925 = vst.msk [vmem:[%s1307_s25 + $0x1e8] sm:$0xff] %vm364_vm4, %v458_v62  ;;  %v777_v62 = vld [vmem:[%s1307_s25 + $0x1d0] sm:$0xff] (%p1604_p9) }
 0x154   : > { %v361_v63 = vpop.trf.xlu0  ;;  %v715_v31 = vld [vmem:[%s1307_s25 + $0xd8] sm:$0xff] (%p1604_p9)  ;;  %778 = vst [vmem:[%s1446_s9 + $0x2d0] sm:$0xff] (%p1604_p9), %v777_v62 }
 0x155   : > { %394 = vst.msk [vmem:[%s1307_s25 + $0xe8] sm:$0xff] %vm364_vm4, %v361_v63  ;;  %716 = vst [vmem:[%s1446_s9 + $0xd8] sm:$0xff] (%p1604_p9), %v715_v31  ;;  %v779_v63 = vld [vmem:[%s1307_s25 + $0x1d8] sm:$0xff] (%p1604_p9) }
 0x156   : > { %v459_v0 = vpop.trf.xlu1  ;;  %780 = vst [vmem:[%s1446_s9 + $0x2d8] sm:$0xff] (%p1604_p9), %v779_v63 }
 0x157   : > { %926 = vst.msk [vmem:[%s1307_s25 + $0x1f0] sm:$0xff] %vm364_vm4, %v459_v0  ;;  %v781_v0 = vld [vmem:[%s1307_s25 + $0x1e0] sm:$0xff] (%p1604_p9) }
 0x158   : > { %v362_v2 = vpop.trf.xlu0  ;;  %v717_v32 = vld [vmem:[%s1307_s25 + $0xe0] sm:$0xff] (%p1604_p9)  ;;  %782 = vst [vmem:[%s1446_s9 + $0x2e0] sm:$0xff] (%p1604_p9), %v781_v0 }
 0x159   : > { %395 = vst.msk [vmem:[%s1307_s25 + $0xf0] sm:$0xff] %vm364_vm4, %v362_v2  ;;  %500 = sbr.rel (!%p1604_p9) target bundleno = 358 (0x166), region = 40  ;;  %718 = vst [vmem:[%s1446_s9 + $0xe0] sm:$0xff] (%p1604_p9), %v717_v32 }
 0x15a   : > { %v460_v3 = vpop.trf.xlu1  ;;  %v783_v2 = vld [vmem:[%s1307_s25 + $0x1e8] sm:$0xff] (%p1604_p9) }
 0x15b   : > { %927 = vst.msk [vmem:[%s1307_s25 + $0x1f8] sm:$0xff] %vm364_vm4, %v460_v3  ;;  %784 = vst [vmem:[%s1446_s9 + $0x2e8] sm:$0xff] (%p1604_p9), %v783_v2 }
 0x15c   : > { %v363_v4 = vpop.trf.xlu0  ;;  %v719_v33 = vld [vmem:[%s1307_s25 + $0xe8] sm:$0xff] (%p1604_p9) }
 0x15d   : > { %396 = vst.msk [vmem:[%s1307_s25 + $0xf8] sm:$0xff] %vm364_vm4, %v363_v4  ;;  %720 = vst [vmem:[%s1446_s9 + $0xe8] sm:$0xff] (%p1604_p9), %v719_v33 }
 0x15e   : > { %v785_v3 = vld [vmem:[%s1307_s25 + $0x1f0] sm:$0xff] }
 0x15f   : > { %786 = vst [vmem:[%s1446_s9 + $0x2f0] sm:$0xff] %v785_v3 }
 0x160   : > { %v721_v34 = vld [vmem:[%s1307_s25 + $0xf0] sm:$0xff] }
 0x161   : > { %722 = vst [vmem:[%s1446_s9 + $0xf0] sm:$0xff] %v721_v34 }
 0x162   : > { %v787_v4 = vld [vmem:[%s1307_s25 + $0x1f8] sm:$0xff] }
 0x163   : > { %788 = vst [vmem:[%s1446_s9 + $0x2f8] sm:$0xff] %v787_v4 }
 0x164   : > { %v723_v35 = vld [vmem:[%s1307_s25 + $0xf8] sm:$0xff] }
 0x165   : > { %724 = vst [vmem:[%s1446_s9 + $0xf8] sm:$0xff] %v723_v35 }
 0x166 PF: > { %s16_s14 = sadd.s32 1, %s1137_s14   ;;  %s1605_s9 = smov %s1121_s10 }
 0x167   : > { %p13_p4 = scmp.ge.s32.totalorder %s16_s14, 4   ;;  %s1606_s10 = smov %s1125_s11 }
 0x168   : > { %s1607_s11 = smov %s1244_s15  ;;  %s1608_s12 = smov %s1133_s13 }
 0x169   : > { %s1609_s13 = smov %s1611_s29  ;;  %15 = sbr.rel (!%p13_p4) target bundleno = 5 (0x5), region = 112 }
 0x16e   :  { %804 = vsyncpa [#allocation3], 1 }
 0x16f   :  { %806 = vsyncpa [#allocation3 + $0x1], 1 }
 0x170   :  { %807 = vsyncpa [#allocation5], 1 }
 0x171   :  { %809 = vsyncpa [#allocation5 + $0x1], 1 }

</bundles_post_ra>
